<compile_context>
chip_gen: v5e
topology: v5e:2x2
jax: 0.10.0
libtpu: 0.0.40
codegen_flags: <defaults>
</compile_context>

<pallas_src>
import math
import numpy as np
import jax
import jax.numpy as jnp
from jax.experimental import pallas as pl
from jax.experimental.pallas import tpu as pltpu


# ----------------------------------------------------------------------------
# One-time probe of the pltpu.roll rotate direction (defensive): the kernel is
# built against jnp.roll semantics, i.e. out[i] == in[(i - shift) mod n].
# Probed on a 256-lane (2-vreg) row so cross-vreg behaviour is covered.
_ROLL_MATCHES_JNP = None


def _roll_matches_jnp():
    global _ROLL_MATCHES_JNP
    if _ROLL_MATCHES_JNP is None:
        def probe(x_ref, o_ref):
            o_ref[...] = pltpu.roll(x_ref[...], 1, axis=1)

        x = jnp.asarray(np.tile(np.arange(256, dtype=np.float32), (8, 1)))
        y = jax.device_get(pl.pallas_call(
            probe, out_shape=jax.ShapeDtypeStruct((8, 256), jnp.float32))(x))
        if y[0, 0] == 255.0 and y[0, 128] == 127.0:
            _ROLL_MATCHES_JNP = True          # jnp.roll semantics
        elif y[0, 0] == 1.0 and y[0, 128] == 129.0:
            _ROLL_MATCHES_JNP = False         # reversed rotate
        else:
            raise RuntimeError("unexpected pltpu.roll semantics")
    return _ROLL_MATCHES_JNP


# ----------------------------------------------------------------------------
# Kernel
def make_grapher_kernel(H, W, C, K, BT, roll_is_jnp):
    HW = H * W
    inv_sqrt2 = 1.0 / math.sqrt(2.0)
    # torch's  cat([x[..., -H//2:, :], x[..., :-H//2, :]])  == roll by ceil(H/2)
    sh = -((-H) // 2)
    sw = -((-W) // 2)
    prec = jax.lax.Precision.HIGHEST   # exact f32 matmuls on the MXU

    def lane_roll(v, shift):
        """jnp.roll(..., axis=-1 over flat HW) as an XLU lane rotation.

        Operates on the (BT*C, HW) view so one rotate covers all BT images.
        """
        s = shift % HW
        if s == 0:
            return v
        if not roll_is_jnp:
            s = HW - s
        r = pltpu.roll(v.reshape(BT * C, HW), s, axis=1)
        return r.reshape(BT, C, HW)

    def kernel(x_ref, wm_ref, wpos_ref, pe_b_ref,
               w1_ref, b1_ref, w2a_ref, w2b_ref, b2_ref, w3_ref, b3_ref,
               out_ref):
        x = x_ref[...]                 # (BT, C, HW)
        wpos = wpos_ref[...]           # (1, HW) int32: w coordinate per lane

        def roll_h(v, i):
            # roll by +i along H == flat roll by i*W (rows contiguous).
            return lane_roll(v, i * W)

        def roll_w(v, j):
            # roll by +j along W: flat roll is right for lanes with w >= j;
            # a second roll (by j - W) fixes the cross-row wrap.
            r1 = lane_roll(v, j)
            r2 = lane_roll(v, j - W)
            return jnp.where(wpos < j, r2, r1)

        def l1_over_c(d):
            # L1 over the channel (sublane) axis -> (BT, 1, HW), XLU reduce.
            return jnp.sum(jnp.abs(d), axis=1, keepdims=True)

        def conv1x1(w, xin):
            # 1x1 conv on the MXU: (Co, Ci) @ (Ci, HW), per image (BT small).
            return jnp.stack(
                [jnp.dot(w, xin[bi], precision=prec,
                         preferred_element_type=jnp.float32)
                 for bi in range(BT)], axis=0)

        # ---- ConditionalPositionEncoding: depthwise 7x7 conv + bias + residual
        # Tap t=(dh*7+dw) reads pixel (h+dh-3, w+dw-3): one flat roll + the
        # host-precomputed masked weight wm[t] (zero padding + row wrap).
        acc = x * wm_ref[24][None]                       # center tap (3, 3)
        for t in range(49):
            if t == 24:
                continue
            a, b = t // 7 - 3, t % 7 - 3
            acc = acc + lane_roll(x, -(a * W + b)) * wm_ref[t][None]
        xc = acc + pe_b_ref[...][None] + x

        # ---- fc1: 1x1 conv + BatchNorm (folded) ----
        x1 = conv1x1(w1_ref[...], xc) + b1_ref[...][None]

        # ---- DynamicMRConv4d ----
        xr = roll_w(roll_h(x1, sh), sw)
        norm = l1_over_c(x1 - xr)                         # (BT, 1, HW)
        mean = jnp.sum(norm, axis=2, keepdims=True) / HW  # per-image (BT,1,1)
        var = jnp.sum((norm - mean) ** 2, axis=2, keepdims=True) / (HW - 1)
        thresh = mean - jnp.sqrt(var)                     # torch.std unbiased

        x_j = jnp.zeros_like(x1)
        for i in range(K, H, K):                          # i == 0 is a no-op
            d = roll_h(x1, i) - x1
            x_j = jnp.maximum(x_j, jnp.where(l1_over_c(d) < thresh, d, 0.0))
        for j in range(K, W, K):                          # j == 0 is a no-op
            d = roll_w(x1, j) - x1
            x_j = jnp.maximum(x_j, jnp.where(l1_over_c(d) < thresh, d, 0.0))

        # cat([x1, x_j], channel) -> 1x1 conv == two MXU dots, + BN (folded)
        h = (conv1x1(w2a_ref[...], x1) + conv1x1(w2b_ref[...], x_j)
             + b2_ref[...][None])
        h = 0.5 * h * (1.0 + jax.lax.erf(h * inv_sqrt2))  # exact nn.GELU()

        # ---- fc2: 1x1 conv + BatchNorm (folded) ----
        out_ref[...] = conv1x1(w3_ref[...], h) + b3_ref[...][None]

    return kernel


# ----------------------------------------------------------------------------
# Wrapper helpers
def _tap_masks(H, W):
    """Validity mask per 7x7 tap for the zero-padded depthwise conv."""
    HW = H * W
    hh = np.arange(H)[:, None]
    ww = np.arange(W)[None, :]
    masks = np.zeros((49, HW), np.float32)
    for t in range(49):
        a, b = t // 7 - 3, t % 7 - 3
        valid = (hh + a >= 0) & (hh + a < H) & (ww + b >= 0) & (ww + b < W)
        masks[t] = valid.reshape(-1).astype(np.float32)
    return masks


def _pick_bt(B, max_bt=8):
    """Images per grid step: largest divisor of B (<= max_bt) that keeps an
    even number of grid steps (feeds both v7x TensorCores)."""
    best = 1
    for bt in range(1, min(B, max_bt) + 1):
        if B % bt == 0 and (B // bt) % 2 == 0:
            best = bt
    return best


def grapher_pallas(x_nchw, params, K, bt=None):
    B, C, H, W = x_nchw.shape
    HW = H * W
    pe_w, pe_b, w1, b1, w2a, w2b, b2, w3, b3 = params
    if bt is None:
        bt = _pick_bt(B)
    assert B % bt == 0

    # NCHW -> (B, C, H*W) is a free reshape (no transpose, no padding pass).
    x = x_nchw.reshape(B, C, HW).astype(jnp.float32)
    # Hoisted masked depthwise weights: wm[t] = pe_w[:, t] * valid_mask[t].
    wm = (jnp.asarray(_tap_masks(H, W))[:, None, :] *
          jnp.transpose(pe_w)[:, :, None]).astype(jnp.float32)   # (49, C, HW)
    wpos = jnp.asarray(np.tile(np.arange(W, dtype=np.int32), H).reshape(1, HW))

    const2 = lambda b: (0, 0)
    const3 = lambda b: (0, 0, 0)
    out = pl.pallas_call(
        make_grapher_kernel(H, W, C, K, bt, _roll_matches_jnp()),
        out_shape=jax.ShapeDtypeStruct((B, C, HW), jnp.float32),
        grid_spec=pltpu.PrefetchScalarGridSpec(
            num_scalar_prefetch=0,
            grid=(B // bt,),
            in_specs=[
                pl.BlockSpec((bt, C, HW), lambda b: (b, 0, 0)),  # x (BT images)
                pl.BlockSpec((49, C, HW), const3),               # masked CPE W
                pl.BlockSpec((1, HW), const2),                   # w coordinate
                pl.BlockSpec((C, 1), const2),                    # CPE bias
                pl.BlockSpec((C, C), const2),                    # fc1 W (folded)
                pl.BlockSpec((C, 1), const2),                    # fc1 b
                pl.BlockSpec((C, C), const2),                    # graph W (x half)
                pl.BlockSpec((C, C), const2),                    # graph W (x_j half)
                pl.BlockSpec((C, 1), const2),                    # graph b
                pl.BlockSpec((C, C), const2),                    # fc2 W (folded)
                pl.BlockSpec((C, 1), const2),                    # fc2 b
            ],
            out_specs=pl.BlockSpec((bt, C, HW), lambda b: (b, 0, 0)),
        ),
        compiler_params=pltpu.CompilerParams(
            dimension_semantics=("parallel",)),
    )(x, wm, wpos, pe_b, w1, b1, w2a, w2b, b2, w3, b3)
    return out.reshape(B, C, H, W)


# ----------------------------------------------------------------------------
# Parameters (synthetic, deterministic; BN folded in eval mode)
def init_params(C, key):
    ks = jax.random.split(key, 14)

    def nrm(k, shape, s=0.1):
        return s * jax.random.normal(k, shape, jnp.float32)

    eps = 1e-5
    # cpe.pe: depthwise Conv2d(C, C, 7, groups=C), torch weight (C, 1, 7, 7)
    pe_w_t = nrm(ks[0], (C, 1, 7, 7))
    pe_b = nrm(ks[1], (C,))
    # fc1: Conv2d(C, C, 1) + BN(C)
    w1_t, b1_t = nrm(ks[2], (C, C)), nrm(ks[3], (C,))
    g1, beta1 = 1.0 + nrm(ks[4], (C,)), nrm(ks[5], (C,))
    # graph_conv.nn: Conv2d(2C, C, 1) + BN(C) + GELU
    w2_t, b2_t = nrm(ks[6], (C, 2 * C)), nrm(ks[7], (C,))
    g2, beta2 = 1.0 + nrm(ks[8], (C,)), nrm(ks[9], (C,))
    # fc2: Conv2d(C, C, 1) + BN(C)
    w3_t, b3_t = nrm(ks[10], (C, C)), nrm(ks[11], (C,))
    g3, beta3 = 1.0 + nrm(ks[12], (C,)), nrm(ks[13], (C,))

    def fold(w_oi, b_o, gamma, beta):
        # inference-mode BN with running_mean=0, running_var=1, folded into conv
        scale = gamma / jnp.sqrt(1.0 + eps)
        return w_oi * scale[:, None], b_o * scale + beta

    w1f, b1f = fold(w1_t, b1_t, g1, beta1)
    w2f, b2f = fold(w2_t, b2_t, g2, beta2)
    w3f, b3f = fold(w3_t, b3_t, g3, beta3)

    pe_w = pe_w_t[:, 0].reshape(C, 49)       # (C, kh*kw), tap t = dh*7 + dw
    return (pe_w, pe_b.reshape(C, 1),
            w1f, b1f.reshape(C, 1),
            w2f[:, :C], w2f[:, C:], b2f.reshape(C, 1),
            w3f, b3f.reshape(C, 1))


# ----------------------------------------------------------------------------
# Pure-JAX reference (NCHW, exact f32 MACs) for validation
def grapher_ref(x_nchw, params, K):
    pe_w, pe_b, w1, b1, w2a, w2b, b2, w3, b3 = params
    x = x_nchw.astype(jnp.float32)
    B, C, H, W = x.shape

    def bc(v):                      # (C, 1) -> (1, C, 1, 1)
        return v[:, 0][None, :, None, None]

    def conv1x1(w, xin):            # w: (Co, Ci), xin: (B, Ci, H, W)
        acc = w[:, 0][None, :, None, None] * xin[:, 0:1]
        for ci in range(1, xin.shape[1]):
            acc = acc + w[:, ci][None, :, None, None] * xin[:, ci:ci + 1]
        return acc

    def l1c(d):
        s = d[:, 0:1]
        for c in range(1, d.shape[1]):
            s = s + d[:, c:c + 1]
        return s

    xpad = jnp.pad(x, ((0, 0), (0, 0), (3, 3), (3, 3)))
    acc = x * pe_w[:, 24][None, :, None, None]
    for t in range(49):
        if t == 24:
            continue
        dh, dw = t // 7, t % 7
        acc = acc + xpad[:, :, dh:dh + H, dw:dw + W] * pe_w[:, t][None, :, None, None]
    xc = acc + bc(pe_b) + x
    x1 = conv1x1(w1, xc) + bc(b1)

    sh, sw = -((-H) // 2), -((-W) // 2)
    xr = jnp.roll(jnp.roll(x1, sh, axis=2), sw, axis=3)
    norm = l1c(jnp.abs(x1 - xr))                               # (B, 1, H, W)
    mean = jnp.sum(norm, axis=(2, 3), keepdims=True) / (H * W)
    var = jnp.sum((norm - mean) ** 2, axis=(2, 3), keepdims=True) / (H * W - 1)
    thresh = mean - jnp.sqrt(var)

    x_j = jnp.zeros_like(x1)
    for i in range(0, H, K):
        xr_i = jnp.roll(x1, i, axis=2)
        dist = l1c(jnp.abs(x1 - xr_i))
        x_j = jnp.maximum(x_j, jnp.where(dist < thresh, xr_i - x1, 0.0))
    for j in range(0, W, K):
        xr_j = jnp.roll(x1, j, axis=3)
        dist = l1c(jnp.abs(x1 - xr_j))
        x_j = jnp.maximum(x_j, jnp.where(dist < thresh, xr_j - x1, 0.0))

    h = conv1x1(w2a, x1) + conv1x1(w2b, x_j) + bc(b2)
    h = 0.5 * h * (1.0 + jax.lax.erf(h * (1.0 / math.sqrt(2.0))))
    return conv1x1(w3, h) + bc(b3)


if __name__ == "__main__":
    B, C, H, W, K = 4, 8, 16, 16, 4          # -> BT=2, grid=(2,) (even steps)
    key = jax.random.PRNGKey(0)
    kx, kp = jax.random.split(key)
    x = jax.random.normal(kx, (B, C, H, W), jnp.float32)
    params = init_params(C, kp)

    out = jax.block_until_ready(grapher_pallas(x, params, K))
    ref = grapher_ref(x, params, K)

    assert out.shape == (B, C, H, W)
    err = float(jnp.max(jnp.abs(out - ref)))
    if err < 2e-3:
        print("KERNEL_OK")
    else:
        print(f"MISMATCH max_abs_err={err}")
</pallas_src>

<mosaic_0001>
module attributes {stable_mosaic.version = 11 : i64} {
  func.func @probe(%arg0: memref<8x256xf32, #tpu.memory_space<vmem>>, %arg1: memref<8x256xf32, #tpu.memory_space<vmem>>) attributes {dimension_semantics = [], scalar_prefetch = 0 : i64, scratch_operands = 0 : i64, tpu.core_type = #tpu.core_type<tc>} {
    %c0 = arith.constant 0 : index
    %c0_0 = arith.constant 0 : index
    %0 = vector.load %arg0[%c0, %c0_0] : memref<8x256xf32, #tpu.memory_space<vmem>>, vector<8x256xf32>
    %c1_i32 = arith.constant 1 : i32
    %1 = tpu.dynamic_rotate %0 by %c1_i32 dim 1 : vector<8x256xf32>, i32 -> vector<8x256xf32>
    %c0_1 = arith.constant 0 : index
    %c0_2 = arith.constant 0 : index
    %2 = vector.load %arg1[%c0_1, %c0_2] : memref<8x256xf32, #tpu.memory_space<vmem>>, vector<8x256xf32>
    tpu.vector_store %arg1[%c0_1, %c0_2], %1 {strides = array<i32>} : memref<8x256xf32, #tpu.memory_space<vmem>>, vector<8x256xf32>,
    return
  }
}

</mosaic_0001>

<bundles_post_ra>
// kernel: tpu_custom_call.1
= control target key start
LH: loop header
LB: loop body
LE: loop exit
PB: predicated region body
PF: predicated region fallthrough
CT: control target
= control target key end

     0   :  { %6 = vsyncpa [#allocation3], 0  ;;  %s127_s0 = inlined_call_operand.hbm [shape: f32[8,256], index: 0, kind: input, shape index: {}]   ;;  %s128_s1 = inlined_call_operand.hbm [shape: f32[8,256], index: 1, kind: output, shape index: {}]  }
   0x1   :  { %7 = vsyncpa [#allocation4], 0  ;;  %s13_s8 = sshll.u32 %s127_s0, 4  ;;  %s108_s9 = smov [#allocation2]   ;;  %s14_s8 = int_to_ptr.hbm [resolvable:$true] %s13_s8 }
   0x2   :  { %s15_s10 = sshll.u32 %s108_s9, 4  ;;  %s16_s10 = int_to_ptr.vmem [resolvable:$true] %s15_s10 }
   0x3   :  { %18 = dma.hbm_to_vmem [thread:$0]  %s14_s8, 256, %s16_s10, [#allocation3]  }
   0x4   :  { %104 = dma.done.wait [#allocation3], 256  }
   0x5   :  { %105 = vsyncadd [#allocation3], 4294967040  ;;  %v23_v0 = vld [vmem:[#allocation2] sm:$0xff]  ;;  %s109_s11 = smov 1   ;;  %v24_v1 = vld [vmem:[#allocation2 + $0x8] sm:$0xff]  ;;  %v29_v2 = vlaneseq  ;;  %s110_s12 = smov [#allocation5]  }
   0x6   :  { %25 = vrot.lane.b32.xlu0 %v23_v0, %s109_s11  ;;  %s41_s13 = sshll.u32 %s110_s12, 4  ;;  %s43_s15 = sshll.u32 %s128_s1, 4  ;;  %s42_s13 = int_to_ptr.vmem [resolvable:$true] %s41_s13  ;;  %s44_s15 = int_to_ptr.hbm [resolvable:$true] %s43_s15 }
   0x7   :  { %v30_v4 = vand.u32 127, %v29_v2 }
   0x9   :  { %vm31_vm0 = vcmp.lt.s32.totalorder %v30_v4, 1 }
   0xe   :  { %27 = vrot.lane.b32.xlu0 %v24_v1, %s109_s11 }
  0x78   :  { %v26_v3 = vpop.permute.xlu0 %25 }
  0x80   :  { %v28_v5 = vpop.permute.xlu0 %27 }
  0x81   :  { %v32_v6 = vsel %vm31_vm0, %v26_v3, %v28_v5  ;;  %v33_v7 = vsel %vm31_vm0, %v28_v5, %v26_v3 }
  0x82   :  { %34 = vst [vmem:[#allocation5] sm:$0xff] %v33_v7 }
  0x83   :  { %35 = vst [vmem:[#allocation5 + $0x8] sm:$0xff] %v32_v6 }
  0x84   :  { %46 = dma.vmem_to_hbm [thread:$0]  %s42_s13, 256, %s44_s15, [#allocation4]  }
  0x85   :  { %106 = dma.done.wait [#allocation4], 256  }
  0x86   :  { %107 = vsyncadd [#allocation4], 4294967040 }
  0x87   :  { %51 = vsyncpa [#allocation3], 1 }
  0x88   :  { %52 = vsyncpa [#allocation4], 1 }

</bundles_post_ra>
